<compile_context>
chip_gen: v7x
topology: tpu7x:2x2x1
jax: 0.10.0
libtpu: 0.0.40
codegen_flags: <defaults>
</compile_context>

<pallas_src>
import math

import jax
import jax.numpy as jnp
from jax.experimental import pallas as pl
from jax.experimental.pallas import tpu as pltpu

# --- model hyperparameters (small, consistent with the module) -------------
B = 2          # batch
S = 8          # sequence length
D_MODEL = 32   # d_model
N_HEADS = 4    # n_heads
D_K = D_MODEL // N_HEADS   # = d_v = 8
G = B * N_HEADS            # head-batched "group" dimension


def mha_kernel(q_ref, k_ref, v_ref,
               wq_ref, bq_ref, wk_ref, bk_ref, wv_ref, bv_ref,
               wo_ref, bo_ref,
               out_ref, attn_ref):
    scale = 1.0 / math.sqrt(D_K)

    def bcast_heads(x):  # [B, S, D] -> [G, S, D]; leading-dim broadcast only
        return jnp.broadcast_to(x[:, None], (B, N_HEADS, S, D_MODEL)).reshape(
            G, S, D_MODEL)

    xq = bcast_heads(q_ref[...])
    xk = bcast_heads(k_ref[...])
    xv = bcast_heads(v_ref[...])

    # Head-batched projections: one batched MXU matmul per Q/K/V, head-major
    # output [G, S, D_K].  No lane slicing, no concatenation, no transposes.
    qh = jnp.einsum("gsd,gdk->gsk", xq, wq_ref[...],
                    preferred_element_type=jnp.float32) + bq_ref[...]
    kh = jnp.einsum("gsd,gdk->gsk", xk, wk_ref[...],
                    preferred_element_type=jnp.float32) + bk_ref[...]
    vh = jnp.einsum("gsd,gdk->gsk", xv, wv_ref[...],
                    preferred_element_type=jnp.float32) + bv_ref[...]

    # Scaled dot-product attention, batched over (batch, head).
    scores = jnp.einsum("gqd,gkd->gqk", qh, kh,
                        preferred_element_type=jnp.float32) * scale   # [G,S,S]
    m = jnp.max(scores, axis=-1, keepdims=True)
    e = jnp.exp(scores - m)
    w = e / jnp.sum(e, axis=-1, keepdims=True)   # exact softmax (PyTorch match)

    # Head-major store; wrapper does no transpose.
    attn_ref[...] = w.reshape(B, N_HEADS, S, S)

    ctx = jnp.einsum("gqk,gkd->gqd", w, vh,
                     preferred_element_type=jnp.float32)              # [G,S,Dk]

    # Output projection, also head-batched: per-head partials then a cheap
    # leading-dim reduction over heads (elementwise vreg adds, no XLU).
    partial = jnp.einsum("gsd,gde->gse", ctx, wo_ref[...],
                         preferred_element_type=jnp.float32)          # [G,S,D]
    out = jnp.sum(partial.reshape(B, N_HEADS, S, D_MODEL), axis=1) + bo_ref[...]
    out_ref[...] = out


def prepare_kernel_params(params):
    """One-time (init-time) conversion of PyTorch-layout params into the
    head-batched layouts the kernel consumes.  Nothing here runs per call."""
    wq, bq, wk, bk, wv, bv, wo, bo = params

    def in_proj_weight(w):   # [D, D] -> [G, D, D_K]
        w_h = w.reshape(D_MODEL, N_HEADS, D_K).transpose(1, 0, 2)   # [H, D, Dk]
        return jnp.broadcast_to(
            w_h[None], (B, N_HEADS, D_MODEL, D_K)).reshape(G, D_MODEL, D_K)

    def in_proj_bias(b):     # [D] -> [G, 1, D_K]
        b_h = b.reshape(N_HEADS, D_K)
        return jnp.broadcast_to(
            b_h[None, :, None, :], (B, N_HEADS, 1, D_K)).reshape(G, 1, D_K)

    wo_h = wo.reshape(N_HEADS, D_K, D_MODEL)                          # [H,Dk,D]
    wo_g = jnp.broadcast_to(
        wo_h[None], (B, N_HEADS, D_K, D_MODEL)).reshape(G, D_K, D_MODEL)
    bo2 = bo.reshape(1, 1, D_MODEL)

    return (in_proj_weight(wq), in_proj_bias(bq),
            in_proj_weight(wk), in_proj_bias(bk),
            in_proj_weight(wv), in_proj_bias(bv),
            wo_g, bo2)


def multi_head_attention(Q, K, V, kernel_params):
    """Q, K, V: [B, S, D_MODEL] float32.  Returns (output, attn_weights)."""
    vmem = pltpu.MemorySpace.VMEM
    out, attn = pl.pallas_call(
        mha_kernel,
        out_shape=(
            jax.ShapeDtypeStruct((B, S, D_MODEL), jnp.float32),
            jax.ShapeDtypeStruct((B, N_HEADS, S, S), jnp.float32),
        ),
        in_specs=[pl.BlockSpec(memory_space=vmem)] * 11,
        out_specs=(pl.BlockSpec(memory_space=vmem),
                   pl.BlockSpec(memory_space=vmem)),
    )(Q, K, V, *kernel_params)
    return out, attn


def init_params(key):
    ks = jax.random.split(key, 8)
    scale = 1.0 / math.sqrt(D_MODEL)
    wq = jax.random.uniform(ks[0], (D_MODEL, D_MODEL), jnp.float32, -scale, scale)
    bq = jax.random.uniform(ks[1], (D_MODEL,), jnp.float32, -scale, scale)
    wk = jax.random.uniform(ks[2], (D_MODEL, D_MODEL), jnp.float32, -scale, scale)
    bk = jax.random.uniform(ks[3], (D_MODEL,), jnp.float32, -scale, scale)
    wv = jax.random.uniform(ks[4], (D_MODEL, D_MODEL), jnp.float32, -scale, scale)
    bv = jax.random.uniform(ks[5], (D_MODEL,), jnp.float32, -scale, scale)
    wo = jax.random.uniform(ks[6], (D_MODEL, D_MODEL), jnp.float32, -scale, scale)
    bo = jax.random.uniform(ks[7], (D_MODEL,), jnp.float32, -scale, scale)
    return (wq, bq, wk, bk, wv, bv, wo, bo)


def reference_mha(Q, K, V, params):
    """Pure-JAX reference matching the PyTorch forward semantics."""
    wq, bq, wk, bk, wv, bv, wo, bo = params

    def split_heads(x):  # [B,S,D] -> [B,H,S,dk]
        return x.reshape(B, S, N_HEADS, D_K).transpose(0, 2, 1, 3)

    qh = split_heads(Q @ wq + bq)
    kh = split_heads(K @ wk + bk)
    vh = split_heads(V @ wv + bv)
    scores = jnp.einsum("bhqd,bhkd->bhqk", qh, kh) / math.sqrt(D_K)
    w = jax.nn.softmax(scores, axis=-1)
    attn = jnp.einsum("bhqk,bhkd->bhqd", w, vh)
    attn = attn.transpose(0, 2, 1, 3).reshape(B, S, D_MODEL)
    return attn @ wo + bo, w


if __name__ == "__main__":
    key = jax.random.PRNGKey(0)
    kq, kk, kv, kp = jax.random.split(key, 4)
    Q = jax.random.normal(kq, (B, S, D_MODEL), jnp.float32)
    K = jax.random.normal(kk, (B, S, D_MODEL), jnp.float32)
    V = jax.random.normal(kv, (B, S, D_MODEL), jnp.float32)
    params = init_params(kp)

    # One-time weight preparation (init-time, not per call).
    kernel_params = jax.tree_util.tree_map(jax.block_until_ready,
                                           prepare_kernel_params(params))

    out, attn_w = multi_head_attention(Q, K, V, kernel_params)
    out = jax.block_until_ready(out)
    attn_w = jax.block_until_ready(attn_w)

    # Correctness check against plain-JAX reference (exact softmax in-kernel).
    ref_out, ref_w = reference_mha(Q, K, V, params)
    assert out.shape == (B, S, D_MODEL)
    assert attn_w.shape == (B, N_HEADS, S, S)
    assert jnp.allclose(attn_w, ref_w, atol=1e-4, rtol=1e-4)
    assert jnp.allclose(out, ref_out, atol=1e-4, rtol=1e-4)

    print("KERNEL_OK")
</pallas_src>

<mosaic_0001>
module attributes {stable_mosaic.version = 11 : i64} {
  func.func @mha_kernel(%arg0: memref<2x8x32xf32, #tpu.memory_space<vmem>>, %arg1: memref<2x8x32xf32, #tpu.memory_space<vmem>>, %arg2: memref<2x8x32xf32, #tpu.memory_space<vmem>>, %arg3: memref<8x32x8xf32, #tpu.memory_space<vmem>>, %arg4: memref<8x1x8xf32, #tpu.memory_space<vmem>>, %arg5: memref<8x32x8xf32, #tpu.memory_space<vmem>>, %arg6: memref<8x1x8xf32, #tpu.memory_space<vmem>>, %arg7: memref<8x32x8xf32, #tpu.memory_space<vmem>>, %arg8: memref<8x1x8xf32, #tpu.memory_space<vmem>>, %arg9: memref<8x8x32xf32, #tpu.memory_space<vmem>>, %arg10: memref<1x1x32xf32, #tpu.memory_space<vmem>>, %arg11: memref<2x8x32xf32, #tpu.memory_space<vmem>>, %arg12: memref<2x4x8x8xf32, #tpu.memory_space<vmem>>) attributes {dimension_semantics = [], scalar_prefetch = 0 : i64, scratch_operands = 0 : i64, tpu.core_type = #tpu.core_type<tc>} {
    %c0 = arith.constant 0 : index
    %c0_0 = arith.constant 0 : index
    %c0_1 = arith.constant 0 : index
    %0 = vector.load %arg0[%c0, %c0_0, %c0_1] : memref<2x8x32xf32, #tpu.memory_space<vmem>>, vector<2x8x32xf32>
    %1 = vector.shape_cast %0 : vector<2x8x32xf32> to vector<2x1x8x32xf32>
    %2 = vector.shape_cast %1 : vector<2x1x8x32xf32> to vector<2x1x8x32xf32>
    %3 = vector.broadcast %2 : vector<2x1x8x32xf32> to vector<2x4x8x32xf32>
    %4 = vector.shape_cast %3 : vector<2x4x8x32xf32> to vector<8x8x32xf32>
    %c0_2 = arith.constant 0 : index
    %c0_3 = arith.constant 0 : index
    %c0_4 = arith.constant 0 : index
    %5 = vector.load %arg1[%c0_2, %c0_3, %c0_4] : memref<2x8x32xf32, #tpu.memory_space<vmem>>, vector<2x8x32xf32>
    %6 = vector.shape_cast %5 : vector<2x8x32xf32> to vector<2x1x8x32xf32>
    %7 = vector.shape_cast %6 : vector<2x1x8x32xf32> to vector<2x1x8x32xf32>
    %8 = vector.broadcast %7 : vector<2x1x8x32xf32> to vector<2x4x8x32xf32>
    %9 = vector.shape_cast %8 : vector<2x4x8x32xf32> to vector<8x8x32xf32>
    %c0_5 = arith.constant 0 : index
    %c0_6 = arith.constant 0 : index
    %c0_7 = arith.constant 0 : index
    %10 = vector.load %arg2[%c0_5, %c0_6, %c0_7] : memref<2x8x32xf32, #tpu.memory_space<vmem>>, vector<2x8x32xf32>
    %11 = vector.shape_cast %10 : vector<2x8x32xf32> to vector<2x1x8x32xf32>
    %12 = vector.shape_cast %11 : vector<2x1x8x32xf32> to vector<2x1x8x32xf32>
    %13 = vector.broadcast %12 : vector<2x1x8x32xf32> to vector<2x4x8x32xf32>
    %14 = vector.shape_cast %13 : vector<2x4x8x32xf32> to vector<8x8x32xf32>
    %c0_8 = arith.constant 0 : index
    %c0_9 = arith.constant 0 : index
    %c0_10 = arith.constant 0 : index
    %15 = vector.load %arg3[%c0_8, %c0_9, %c0_10] : memref<8x32x8xf32, #tpu.memory_space<vmem>>, vector<8x32x8xf32>
    "tpu.trace_start"() <{level = 10 : i32, message = "gsd,gdk->gsk"}> : () -> ()
    %cst = arith.constant dense<0.000000e+00> : vector<8x8x8xf32>
    %16 = tpu.matmul %4, %15, %cst {dimension_numbers = #tpu.dot_dimension_numbers<[2], [1], [1], [2], [0, 0, 0, 1, 1, 2], [0], [0]>} : vector<8x8x32xf32>, vector<8x32x8xf32>, vector<8x8x8xf32> -> vector<8x8x8xf32>
    "tpu.trace_stop"() : () -> ()
    %c0_11 = arith.constant 0 : index
    %c0_12 = arith.constant 0 : index
    %c0_13 = arith.constant 0 : index
    %17 = vector.load %arg4[%c0_11, %c0_12, %c0_13] : memref<8x1x8xf32, #tpu.memory_space<vmem>>, vector<8x1x8xf32>
    %18 = vector.broadcast %17 : vector<8x1x8xf32> to vector<8x8x8xf32>
    %19 = arith.addf %16, %18 : vector<8x8x8xf32>
    %c0_14 = arith.constant 0 : index
    %c0_15 = arith.constant 0 : index
    %c0_16 = arith.constant 0 : index
    %20 = vector.load %arg5[%c0_14, %c0_15, %c0_16] : memref<8x32x8xf32, #tpu.memory_space<vmem>>, vector<8x32x8xf32>
    "tpu.trace_start"() <{level = 10 : i32, message = "gsd,gdk->gsk"}> : () -> ()
    %cst_17 = arith.constant dense<0.000000e+00> : vector<8x8x8xf32>
    %21 = tpu.matmul %9, %20, %cst_17 {dimension_numbers = #tpu.dot_dimension_numbers<[2], [1], [1], [2], [0, 0, 0, 1, 1, 2], [0], [0]>} : vector<8x8x32xf32>, vector<8x32x8xf32>, vector<8x8x8xf32> -> vector<8x8x8xf32>
    "tpu.trace_stop"() : () -> ()
    %c0_18 = arith.constant 0 : index
    %c0_19 = arith.constant 0 : index
    %c0_20 = arith.constant 0 : index
    %22 = vector.load %arg6[%c0_18, %c0_19, %c0_20] : memref<8x1x8xf32, #tpu.memory_space<vmem>>, vector<8x1x8xf32>
    %23 = vector.broadcast %22 : vector<8x1x8xf32> to vector<8x8x8xf32>
    %24 = arith.addf %21, %23 : vector<8x8x8xf32>
    %c0_21 = arith.constant 0 : index
    %c0_22 = arith.constant 0 : index
    %c0_23 = arith.constant 0 : index
    %25 = vector.load %arg7[%c0_21, %c0_22, %c0_23] : memref<8x32x8xf32, #tpu.memory_space<vmem>>, vector<8x32x8xf32>
    "tpu.trace_start"() <{level = 10 : i32, message = "gsd,gdk->gsk"}> : () -> ()
    %cst_24 = arith.constant dense<0.000000e+00> : vector<8x8x8xf32>
    %26 = tpu.matmul %14, %25, %cst_24 {dimension_numbers = #tpu.dot_dimension_numbers<[2], [1], [1], [2], [0, 0, 0, 1, 1, 2], [0], [0]>} : vector<8x8x32xf32>, vector<8x32x8xf32>, vector<8x8x8xf32> -> vector<8x8x8xf32>
    "tpu.trace_stop"() : () -> ()
    %c0_25 = arith.constant 0 : index
    %c0_26 = arith.constant 0 : index
    %c0_27 = arith.constant 0 : index
    %27 = vector.load %arg8[%c0_25, %c0_26, %c0_27] : memref<8x1x8xf32, #tpu.memory_space<vmem>>, vector<8x1x8xf32>
    %28 = vector.broadcast %27 : vector<8x1x8xf32> to vector<8x8x8xf32>
    %29 = arith.addf %26, %28 : vector<8x8x8xf32>
    "tpu.trace_start"() <{level = 10 : i32, message = "gqd,gkd->gqk"}> : () -> ()
    %cst_28 = arith.constant dense<0.000000e+00> : vector<8x8x8xf32>
    %30 = tpu.matmul %19, %24, %cst_28 {dimension_numbers = #tpu.dot_dimension_numbers<[2], [2], [1], [1], [0, 0, 0, 1, 1, 1], [0], [0]>} : vector<8x8x8xf32>, vector<8x8x8xf32>, vector<8x8x8xf32> -> vector<8x8x8xf32>
    "tpu.trace_stop"() : () -> ()
    %cst_29 = arith.constant 0.353553385 : f32
    %31 = vector.broadcast %cst_29 : f32 to vector<8x8x8xf32>
    %32 = arith.mulf %30, %31 : vector<8x8x8xf32>
    %cst_30 = arith.constant dense<0xFF800000> : vector<8x8xf32>
    %33 = vector.multi_reduction <maximumf>, %32, %cst_30 [2] : vector<8x8x8xf32> to vector<8x8xf32>
    %34 = vector.shape_cast %33 : vector<8x8xf32> to vector<8x8x1xf32>
    %35 = vector.broadcast %34 : vector<8x8x1xf32> to vector<8x8x8xf32>
    %36 = arith.subf %32, %35 : vector<8x8x8xf32>
    %37 = math.exp %36 : vector<8x8x8xf32>
    %cst_31 = arith.constant dense<0.000000e+00> : vector<8x8xf32>
    %38 = vector.multi_reduction <add>, %37, %cst_31 [2] : vector<8x8x8xf32> to vector<8x8xf32>
    %39 = vector.shape_cast %38 : vector<8x8xf32> to vector<8x8x1xf32>
    %40 = vector.broadcast %39 : vector<8x8x1xf32> to vector<8x8x8xf32>
    %41 = arith.divf %37, %40 : vector<8x8x8xf32>
    %42 = vector.shape_cast %41 : vector<8x8x8xf32> to vector<2x4x8x8xf32>
    %c0_32 = arith.constant 0 : index
    %c0_33 = arith.constant 0 : index
    %c0_34 = arith.constant 0 : index
    %c0_35 = arith.constant 0 : index
    %43 = vector.load %arg12[%c0_32, %c0_33, %c0_34, %c0_35] : memref<2x4x8x8xf32, #tpu.memory_space<vmem>>, vector<2x4x8x8xf32>
    tpu.vector_store %arg12[%c0_32, %c0_33, %c0_34, %c0_35], %42 {strides = array<i32>} : memref<2x4x8x8xf32, #tpu.memory_space<vmem>>, vector<2x4x8x8xf32>,
    "tpu.trace_start"() <{level = 10 : i32, message = "gqk,gkd->gqd"}> : () -> ()
    %cst_36 = arith.constant dense<0.000000e+00> : vector<8x8x8xf32>
    %44 = tpu.matmul %41, %29, %cst_36 {dimension_numbers = #tpu.dot_dimension_numbers<[2], [1], [1], [2], [0, 0, 0, 1, 1, 2], [0], [0]>} : vector<8x8x8xf32>, vector<8x8x8xf32>, vector<8x8x8xf32> -> vector<8x8x8xf32>
    "tpu.trace_stop"() : () -> ()
    %c0_37 = arith.constant 0 : index
    %c0_38 = arith.constant 0 : index
    %c0_39 = arith.constant 0 : index
    %45 = vector.load %arg9[%c0_37, %c0_38, %c0_39] : memref<8x8x32xf32, #tpu.memory_space<vmem>>, vector<8x8x32xf32>
    "tpu.trace_start"() <{level = 10 : i32, message = "gsd,gde->gse"}> : () -> ()
    %cst_40 = arith.constant dense<0.000000e+00> : vector<8x8x32xf32>
    %46 = tpu.matmul %44, %45, %cst_40 {dimension_numbers = #tpu.dot_dimension_numbers<[2], [1], [1], [2], [0, 0, 0, 1, 1, 2], [0], [0]>} : vector<8x8x8xf32>, vector<8x8x32xf32>, vector<8x8x32xf32> -> vector<8x8x32xf32>
    "tpu.trace_stop"() : () -> ()
    %47 = vector.shape_cast %46 : vector<8x8x32xf32> to vector<2x4x8x32xf32>
    %cst_41 = arith.constant dense<0.000000e+00> : vector<2x8x32xf32>
    %48 = vector.multi_reduction <add>, %47, %cst_41 [1] : vector<2x4x8x32xf32> to vector<2x8x32xf32>
    %c0_42 = arith.constant 0 : index
    %c0_43 = arith.constant 0 : index
    %c0_44 = arith.constant 0 : index
    %49 = vector.load %arg10[%c0_42, %c0_43, %c0_44] : memref<1x1x32xf32, #tpu.memory_space<vmem>>, vector<1x1x32xf32>
    %50 = vector.broadcast %49 : vector<1x1x32xf32> to vector<2x8x32xf32>
    %51 = arith.addf %48, %50 : vector<2x8x32xf32>
    %c0_45 = arith.constant 0 : index
    %c0_46 = arith.constant 0 : index
    %c0_47 = arith.constant 0 : index
    %52 = vector.load %arg11[%c0_45, %c0_46, %c0_47] : memref<2x8x32xf32, #tpu.memory_space<vmem>>, vector<2x8x32xf32>
    tpu.vector_store %arg11[%c0_45, %c0_46, %c0_47], %51 {strides = array<i32>} : memref<2x8x32xf32, #tpu.memory_space<vmem>>, vector<2x8x32xf32>,
    return
  }
}

</mosaic_0001>

<bundles_post_ra>
// kernel: tpu_custom_call.1
= control target key start
LH: loop header
LB: loop body
LE: loop exit
PB: predicated region body
PF: predicated region fallthrough
CT: control target
= control target key end

     0   :  { %18 = vsyncpa [#allocation3], 0  ;;  %v4821_v3 = vmov 0.0|0.0   ;;  %vm4822_vm0 = vmmov 0   ;;  %v4823_v11 = vmov 0.0   ;;  %vm136_vm1 = vcmask 261120   ;;  %s5626_s0 = inlined_call_operand.vmem [shape: f32[2,8,32], index: 0, kind: input, shape index: {}]   ;;  %s5627_s1 = inlined_call_operand.vmem [shape: f32[2,8,32], index: 1, kind: input, shape index: {}]   ;;  %s5628_s2 = inlined_call_operand.vmem [shape: f32[2,8,32], index: 2, kind: input, shape index: {}]   ;;  %s5629_s3 = inlined_call_operand.vmem [shape: f32[8,32,8], index: 3, kind: input, shape index: {}]   ;;  %s5630_s4 = inlined_call_operand.vmem [shape: f32[8,1,8], index: 4, kind: input, shape index: {}]   ;;  %s5631_s5 = inlined_call_operand.vmem [shape: f32[8,32,8], index: 5, kind: input, shape index: {}]   ;;  %s5632_s6 = inlined_call_operand.vmem [shape: f32[8,1,8], index: 6, kind: input, shape index: {}]   ;;  %s5633_s7 = inlined_call_operand.vmem [shape: f32[8,32,8], index: 7, kind: input, shape index: {}]   ;;  %s5634_s8 = inlined_call_operand.vmem [shape: f32[8,1,8], index: 8, kind: input, shape index: {}]   ;;  %s5635_s9 = inlined_call_operand.vmem [shape: f32[8,8,32], index: 9, kind: input, shape index: {}]   ;;  %s5636_s10 = inlined_call_operand.vmem [shape: f32[1,1,32], index: 10, kind: input, shape index: {}]   ;;  %s5637_s11 = inlined_call_operand.hbm [shape: f32[2,8,32], index: 11, kind: output, shape index: {0}]   ;;  %s5638_s12 = inlined_call_operand.hbm [shape: f32[2,4,8,8], index: 12, kind: output, shape index: {1}]  }
   0x1   :  { %v48_v0 = vld [vmem:[%s5629_s3] sm:$0xff]  ;;  %v49_v1 = vld [vmem:[%s5629_s3 + $0x8] sm:$0xff]  ;;  %4590 = vmatprep.subr.bf16.mxu0 %v4821_v3  ;;  %4596 = vmatprep.subr.bf16.mxu1 %v4821_v3  ;;  %v50_v6 = vld [vmem:[%s5629_s3 + $0x10] sm:$0xff] }
   0x2   :  { %v52_v2 = vld [vmem:[%s5629_s3 + $0x20] sm:$0xff]  ;;  %v4591_v4 = vpack.c.bf16 %v49_v1, %v48_v0  ;;  %v53_v5 = vld [vmem:[%s5629_s3 + $0x28] sm:$0xff]  ;;  %v51_v7 = vld [vmem:[%s5629_s3 + $0x18] sm:$0xff]  ;;  %4214 = vmatprep.mubr.msk.f32.mxu0 %vm4822_vm0, %v4823_v11  ;;  %4225 = vmatprep.mubr.msk.f32.mxu1 %vm4822_vm0, %v4823_v11 }
   0x3   :  { %v4597_v8 = vpack.c.bf16 %v53_v5, %v52_v2  ;;  %v54_v9 = vld [vmem:[%s5629_s3 + $0x30] sm:$0xff]  ;;  %v55_v10 = vld [vmem:[%s5629_s3 + $0x38] sm:$0xff]  ;;  %v4594_v12 = vpack.c.bf16 %v51_v7, %v50_v6  ;;  %v56_v14 = vld [vmem:[%s5629_s3 + $0x40] sm:$0xff] }
   0x4   :  { %4592 = vmatpush3.bf16.msra.mxu0 %v4591_v4  ;;  %v4600_v13 = vpack.c.bf16 %v55_v10, %v54_v9  ;;  %v57_v15 = vld [vmem:[%s5629_s3 + $0x48] sm:$0xff]  ;;  %v60_v16 = vld [vmem:[%s5629_s3 + $0x60] sm:$0xff]  ;;  %v58_v21 = vld [vmem:[%s5629_s3 + $0x50] sm:$0xff] }
   0x5   :  { %4598 = vmatpush3.bf16.msra.mxu1 %v4597_v8  ;;  %4593 = vmatprep.subr.bf16.mxu0 %v4821_v3  ;;  %v61_v17 = vld [vmem:[%s5629_s3 + $0x68] sm:$0xff]  ;;  %v42_v18 = vld [vmem:[%s5626_s0] sm:$0xff]  ;;  %v4603_v19 = vpack.c.bf16 %v57_v15, %v56_v14  ;;  %v59_v22 = vld [vmem:[%s5629_s3 + $0x58] sm:$0xff] }
   0x6   :  { %4599 = vmatprep.subr.bf16.mxu1 %v4821_v3  ;;  %v4609_v20 = vpack.c.bf16 %v61_v17, %v60_v16  ;;  %v62_v23 = vld [vmem:[%s5629_s3 + $0x70] sm:$0xff]  ;;  %v63_v24 = vld [vmem:[%s5629_s3 + $0x78] sm:$0xff]  ;;  %v4606_v25 = vpack.c.bf16 %v59_v22, %v58_v21  ;;  %v64_v27 = vld [vmem:[%s5629_s3 + $0x80] sm:$0xff] }
   0x7   :  { %v4612_v26 = vpack.c.bf16 %v63_v24, %v62_v23  ;;  %v65_v28 = vld [vmem:[%s5629_s3 + $0x88] sm:$0xff]  ;;  %v68_v29 = vld [vmem:[%s5629_s3 + $0xa0] sm:$0xff]  ;;  %v66_v33 = vld [vmem:[%s5629_s3 + $0x90] sm:$0xff] }
   0x8   :  { %4595 = vmatpush3.bf16.msra.mxu0 %v4594_v12  ;;  %v69_v30 = vld [vmem:[%s5629_s3 + $0xa8] sm:$0xff]  ;;  %v4615_v31 = vpack.c.bf16 %v65_v28, %v64_v27  ;;  %v67_v34 = vld [vmem:[%s5629_s3 + $0x98] sm:$0xff]  ;;  %v70_v35 = vld [vmem:[%s5629_s3 + $0xb0] sm:$0xff] }
   0x9   :  { %4601 = vmatpush3.bf16.msra.mxu1 %v4600_v13  ;;  %4602 = vmatprep.subr.bf16.mxu0 %v4821_v3  ;;  %v4621_v32 = vpack.c.bf16 %v69_v30, %v68_v29  ;;  %v71_v36 = vld [vmem:[%s5629_s3 + $0xb8] sm:$0xff]  ;;  %v4618_v37 = vpack.c.bf16 %v67_v34, %v66_v33  ;;  %v72_v39 = vld [vmem:[%s5629_s3 + $0xc0] sm:$0xff]  ;;  %v73_v40 = vld [vmem:[%s5629_s3 + $0xc8] sm:$0xff] }
   0xa   :  { %4608 = vmatprep.subr.bf16.mxu1 %v4821_v3  ;;  %v4624_v38 = vpack.c.bf16 %v71_v36, %v70_v35  ;;  %v76_v41 = vld [vmem:[%s5629_s3 + $0xe0] sm:$0xff]  ;;  %v77_v42 = vld [vmem:[%s5629_s3 + $0xe8] sm:$0xff]  ;;  %v4627_v44 = vpack.c.bf16 %v73_v40, %v72_v39  ;;  %v74_v46 = vld [vmem:[%s5629_s3 + $0xd0] sm:$0xff] }
   0xb   :  { %4215 = vmatmul.mubr.msk.f32.vlgmr.msra.gmra.mrb[0].mxu0 %vm136_vm1, %v42_v18  ;;  %v43_v43 = vld [vmem:[%s5626_s0 + $0x8] sm:$0xff]  ;;  %v4633_v45 = vpack.c.bf16 %v77_v42, %v76_v41  ;;  %v75_v47 = vld [vmem:[%s5629_s3 + $0xd8] sm:$0xff] }
   0xc   :  { %4226 = vmatmul.mubr.msk.f32.vlgmr.msra.gmra.mrb[0].mxu1 %vm136_vm1, %v42_v18  ;;  %4604 = vmatpush3.bf16.msra.mxu0 %v4603_v19 }
   0xd   :  { %4610 = vmatpush3.bf16.msra.mxu1 %v4609_v20  ;;  %4605 = vmatprep.subr.bf16.mxu0 %v4821_v3 }
   0xe   :  { %4611 = vmatprep.subr.bf16.mxu1 %v4821_v3  ;;  %4236 = vmatprep.mubr.msk.f32.mxu0 %vm4822_vm0, %v4823_v11 }
   0xf   :  { %4247 = vmatprep.mubr.msk.f32.mxu1 %vm4822_vm0, %v4823_v11 }
  0x10   :  { %4607 = vmatpush3.bf16.msra.mxu0 %v4606_v25 }
  0x11   :  { %4613 = vmatpush3.bf16.msra.mxu1 %v4612_v26  ;;  %4614 = vmatprep.subr.bf16.mxu0 %v4821_v3 }
  0x12   :  { %4620 = vmatprep.subr.bf16.mxu1 %v4821_v3 }
  0x13   :  { %4237 = vmatmul.mubr.msk.f32.vlgmr.msra.gmra.mrb[2].mxu0 %vm136_vm1, %v42_v18 }
  0x14   :  { %4248 = vmatmul.mubr.msk.f32.vlgmr.msra.gmra.mrb[2].mxu1 %vm136_vm1, %v42_v18  ;;  %4616 = vmatpush3.bf16.msra.mxu0 %v4615_v31 }
  0x15   :  { %4622 = vmatpush3.bf16.msra.mxu1 %v4621_v32  ;;  %4617 = vmatprep.subr.bf16.mxu0 %v4821_v3 }
  0x16   :  { %4623 = vmatprep.subr.bf16.mxu1 %v4821_v3  ;;  %4258 = vmatprep.mubr.msk.f32.mxu0 %vm4822_vm0, %v4823_v11 }
  0x17   :  { %4269 = vmatprep.mubr.msk.f32.mxu1 %vm4822_vm0, %v4823_v11 }
  0x18   :  { %4619 = vmatpush3.bf16.msra.mxu0 %v4618_v37 }
  0x19   :  { %4625 = vmatpush3.bf16.msra.mxu1 %v4624_v38  ;;  %4626 = vmatprep.subr.bf16.mxu0 %v4821_v3 }
  0x1a   :  { %19 = vsyncpa [#allocation5], 0  ;;  %4632 = vmatprep.subr.bf16.mxu1 %v4821_v3  ;;  %v78_v48 = vld [vmem:[%s5629_s3 + $0xf0] sm:$0xff]  ;;  %v79_v49 = vld [vmem:[%s5629_s3 + $0xf8] sm:$0xff]  ;;  %v4630_v50 = vpack.c.bf16 %v75_v47, %v74_v46  ;;  %vm2011_vm2 = vcmask 64512  }
  0x1b   :  { %4259 = vmatmul.mubr.msk.f32.vlgmr.msra.gmra.mrb[4].mxu0 %vm136_vm1, %v43_v43  ;;  %v4636_v51 = vpack.c.bf16 %v79_v49, %v78_v48  ;;  %v703_v52 = vld [vmem:[%s5631_s5] sm:$0xff]  ;;  %v704_v53 = vld [vmem:[%s5631_s5 + $0x8] sm:$0xff]  ;;  %v705_v58 = vld [vmem:[%s5631_s5 + $0x10] sm:$0xff] }
  0x1c   :  { %4270 = vmatmul.mubr.msk.f32.vlgmr.msra.gmra.mrb[4].mxu1 %vm136_vm1, %v43_v43  ;;  %4628 = vmatpush3.bf16.msra.mxu0 %v4627_v44  ;;  %v707_v54 = vld [vmem:[%s5631_s5 + $0x20] sm:$0xff]  ;;  %v708_v55 = vld [vmem:[%s5631_s5 + $0x28] sm:$0xff]  ;;  %v4639_v56 = vpack.c.bf16 %v704_v53, %v703_v52  ;;  %v706_v59 = vld [vmem:[%s5631_s5 + $0x18] sm:$0xff] }
  0x1d   :  { %4634 = vmatpush3.bf16.msra.mxu1 %v4633_v45  ;;  %4629 = vmatprep.subr.bf16.mxu0 %v4821_v3  ;;  %v4645_v57 = vpack.c.bf16 %v708_v55, %v707_v54  ;;  %v709_v60 = vld [vmem:[%s5631_s5 + $0x30] sm:$0xff]  ;;  %v710_v61 = vld [vmem:[%s5631_s5 + $0x38] sm:$0xff]  ;;  %v4642_v62 = vpack.c.bf16 %v706_v59, %v705_v58  ;;  %v711_v0 = vld [vmem:[%s5631_s5 + $0x40] sm:$0xff] }
  0x1e   :  { %4635 = vmatprep.subr.bf16.mxu1 %v4821_v3  ;;  %4280 = vmatprep.mubr.msk.f32.mxu0 %vm4822_vm0, %v4823_v11  ;;  %v4648_v63 = vpack.c.bf16 %v710_v61, %v709_v60  ;;  %v712_v1 = vld [vmem:[%s5631_s5 + $0x48] sm:$0xff]  ;;  %v715_v2 = vld [vmem:[%s5631_s5 + $0x60] sm:$0xff]  ;;  %v713_v8 = vld [vmem:[%s5631_s5 + $0x50] sm:$0xff] }
  0x1f   :  { %4291 = vmatprep.mubr.msk.f32.mxu1 %vm4822_vm0, %v4823_v11  ;;  %v716_v4 = vld [vmem:[%s5631_s5 + $0x68] sm:$0xff]  ;;  %v44_v5 = vld [vmem:[%s5627_s1] sm:$0xff]  ;;  %v4651_v6 = vpack.c.bf16 %v712_v1, %v711_v0  ;;  %v714_v9 = vld [vmem:[%s5631_s5 + $0x58] sm:$0xff] }
  0x20   :  { %4631 = vmatpush3.bf16.msra.mxu0 %v4630_v50  ;;  %v4657_v7 = vpack.c.bf16 %v716_v4, %v715_v2  ;;  %v717_v10 = vld [vmem:[%s5631_s5 + $0x70] sm:$0xff]  ;;  %v718_v12 = vld [vmem:[%s5631_s5 + $0x78] sm:$0xff]  ;;  %v4654_v13 = vpack.c.bf16 %v714_v9, %v713_v8  ;;  %v719_v15 = vld [vmem:[%s5631_s5 + $0x80] sm:$0xff] }
  0x21   :  { %4637 = vmatpush3.bf16.msra.mxu1 %v4636_v51  ;;  %4638 = vmatprep.subr.bf16.mxu0 %v4821_v3  ;;  %v4660_v14 = vpack.c.bf16 %v718_v12, %v717_v10  ;;  %v720_v16 = vld [vmem:[%s5631_s5 + $0x88] sm:$0xff]  ;;  %v723_v17 = vld [vmem:[%s5631_s5 + $0xa0] sm:$0xff]  ;;  %v721_v21 = vld [vmem:[%s5631_s5 + $0x90] sm:$0xff] }
  0x22   :  { %4644 = vmatprep.subr.bf16.mxu1 %v4821_v3  ;;  %v724_v18 = vld [vmem:[%s5631_s5 + $0xa8] sm:$0xff]  ;;  %v4663_v19 = vpack.c.bf16 %v720_v16, %v719_v15  ;;  %v722_v22 = vld [vmem:[%s5631_s5 + $0x98] sm:$0xff]  ;;  %v725_v23 = vld [vmem:[%s5631_s5 + $0xb0] sm:$0xff] }
  0x23   :  { %4281 = vmatmul.mubr.msk.f32.vlgmr.msra.gmra.mrb[6].mxu0 %vm136_vm1, %v43_v43  ;;  %v4669_v20 = vpack.c.bf16 %v724_v18, %v723_v17  ;;  %v726_v24 = vld [vmem:[%s5631_s5 + $0xb8] sm:$0xff]  ;;  %v4666_v25 = vpack.c.bf16 %v722_v22, %v721_v21  ;;  %v727_v27 = vld [vmem:[%s5631_s5 + $0xc0] sm:$0xff]  ;;  %v728_v28 = vld [vmem:[%s5631_s5 + $0xc8] sm:$0xff] }
  0x24   :  { %4292 = vmatmul.mubr.msk.f32.vlgmr.msra.gmra.mrb[6].mxu1 %vm136_vm1, %v43_v43  ;;  %4640 = vmatpush3.bf16.msra.mxu0 %v4639_v56  ;;  %v4672_v26 = vpack.c.bf16 %v726_v24, %v725_v23  ;;  %v731_v29 = vld [vmem:[%s5631_s5 + $0xe0] sm:$0xff]  ;;  %v732_v30 = vld [vmem:[%s5631_s5 + $0xe8] sm:$0xff]  ;;  %v4675_v32 = vpack.c.bf16 %v728_v28, %v727_v27  ;;  %v729_v34 = vld [vmem:[%s5631_s5 + $0xd0] sm:$0xff] }
  0x25   :  { %4646 = vmatpush3.bf16.msra.mxu1 %v4645_v57  ;;  %4641 = vmatprep.subr.bf16.mxu0 %v4821_v3  ;;  %v45_v31 = vld [vmem:[%s5627_s1 + $0x8] sm:$0xff]  ;;  %v4681_v33 = vpack.c.bf16 %v732_v30, %v731_v29  ;;  %v730_v35 = vld [vmem:[%s5631_s5 + $0xd8] sm:$0xff]  ;;  %v733_v36 = vld [vmem:[%s5631_s5 + $0xf0] sm:$0xff] }
  0x26   :  { %4647 = vmatprep.subr.bf16.mxu1 %v4821_v3  ;;  %4302 = vmatprep.mubr.msk.f32.mxu0 %vm4822_vm0, %v4823_v11  ;;  %v734_v37 = vld [vmem:[%s5631_s5 + $0xf8] sm:$0xff]  ;;  %v4678_v38 = vpack.c.bf16 %v730_v35, %v729_v34  ;;  %v1357_v40 = vld [vmem:[%s5633_s7] sm:$0xff]  ;;  %v1358_v41 = vld [vmem:[%s5633_s7 + $0x8] sm:$0xff] }
  0x27   :  { %4313 = vmatprep.mubr.msk.f32.mxu1 %vm4822_vm0, %v4823_v11  ;;  %v4684_v39 = vpack.c.bf16 %v734_v37, %v733_v36  ;;  %v1361_v42 = vld [vmem:[%s5633_s7 + $0x20] sm:$0xff]  ;;  %v1362_v43 = vld [vmem:[%s5633_s7 + $0x28] sm:$0xff]  ;;  %v4687_v44 = vpack.c.bf16 %v1358_v41, %v1357_v40  ;;  %v1359_v46 = vld [vmem:[%s5633_s7 + $0x10] sm:$0xff] }
  0x28   :  { %4643 = vmatpush3.bf16.msra.mxu0 %v4642_v62  ;;  %v4693_v45 = vpack.c.bf16 %v1362_v43, %v1361_v42  ;;  %v1360_v47 = vld [vmem:[%s5633_s7 + $0x18] sm:$0xff]  ;;  %v1363_v48 = vld [vmem:[%s5633_s7 + $0x30] sm:$0xff]  ;;  %v1365_v52 = vld [vmem:[%s5633_s7 + $0x40] sm:$0xff] }
  0x29   :  { %4649 = vmatpush3.bf16.msra.mxu1 %v4648_v63  ;;  %4650 = vmatprep.subr.bf16.mxu0 %v4821_v3  ;;  %v4690_v49 = vpack.c.bf16 %v1360_v47, %v1359_v46  ;;  %v1364_v50 = vld [vmem:[%s5633_s7 + $0x38] sm:$0xff]  ;;  %v1366_v53 = vld [vmem:[%s5633_s7 + $0x48] sm:$0xff]  ;;  %v46_v54 = vld [vmem:[%s5628_s2] sm:$0xff] }
  0x2a   :  { %4656 = vmatprep.subr.bf16.mxu1 %v4821_v3  ;;  %v4696_v51 = vpack.c.bf16 %v1364_v50, %v1363_v48  ;;  %v4699_v55 = vpack.c.bf16 %v1366_v53, %v1365_v52  ;;  %v1369_v56 = vld [vmem:[%s5633_s7 + $0x60] sm:$0xff]  ;;  %v1370_v57 = vld [vmem:[%s5633_s7 + $0x68] sm:$0xff]  ;;  %v1367_v59 = vld [vmem:[%s5633_s7 + $0x50] sm:$0xff] }
  0x2b   :  { %4303 = vmatmul.mubr.msk.f32.vlgmr.msra.gmra.mrb[8].mxu0 %vm136_vm1, %v44_v5  ;;  %v4705_v58 = vpack.c.bf16 %v1370_v57, %v1369_v56  ;;  %v1368_v60 = vld [vmem:[%s5633_s7 + $0x58] sm:$0xff]  ;;  %v1371_v61 = vld [vmem:[%s5633_s7 + $0x70] sm:$0xff]  ;;  %v1373_v1 = vld [vmem:[%s5633_s7 + $0x80] sm:$0xff] }
  0x2c   :  { %4314 = vmatmul.mubr.msk.f32.vlgmr.msra.gmra.mrb[8].mxu1 %vm136_vm1, %v44_v5  ;;  %4652 = vmatpush3.bf16.msra.mxu0 %v4651_v6  ;;  %v4702_v62 = vpack.c.bf16 %v1368_v60, %v1367_v59  ;;  %v1372_v63 = vld [vmem:[%s5633_s7 + $0x78] sm:$0xff]  ;;  %v1374_v2 = vld [vmem:[%s5633_s7 + $0x88] sm:$0xff]  ;;  %v1377_v4 = vld [vmem:[%s5633_s7 + $0xa0] sm:$0xff] }
  0x2d   :  { %4658 = vmatpush3.bf16.msra.mxu1 %v4657_v7  ;;  %4653 = vmatprep.subr.bf16.mxu0 %v4821_v3  ;;  %v4708_v0 = vpack.c.bf16 %v1372_v63, %v1371_v61  ;;  %v1378_v6 = vld [vmem:[%s5633_s7 + $0xa8] sm:$0xff]  ;;  %v1375_v8 = vld [vmem:[%s5633_s7 + $0x90] sm:$0xff]  ;;  %v1376_v9 = vld [vmem:[%s5633_s7 + $0x98] sm:$0xff] }
  0x2e   :  { %4659 = vmatprep.subr.bf16.mxu1 %v4821_v3  ;;  %4324 = vmatprep.mubr.msk.f32.mxu0 %vm4822_vm0, %v4823_v11  ;;  %v4717_v7 = vpack.c.bf16 %v1378_v6, %v1377_v4  ;;  %v1379_v10 = vld [vmem:[%s5633_s7 + $0xb0] sm:$0xff]  ;;  %v4714_v12 = vpack.c.bf16 %v1376_v9, %v1375_v8  ;;  %v1381_v15 = vld [vmem:[%s5633_s7 + $0xc0] sm:$0xff]  ;;  %v1382_v16 = vld [vmem:[%s5633_s7 + $0xc8] sm:$0xff] }
  0x2f   :  { %4335 = vmatprep.mubr.msk.f32.mxu1 %vm4822_vm0, %v4823_v11  ;;  %v47_v17 = vld [vmem:[%s5628_s2 + $0x8] sm:$0xff]  ;;  %v4723_v18 = vpack.c.bf16 %v1382_v16, %v1381_v15  ;;  %v1383_v22 = vld [vmem:[%s5633_s7 + $0xd0] sm:$0xff]  ;;  %v1384_v23 = vld [vmem:[%s5633_s7 + $0xd8] sm:$0xff] }
  0x30   :  { %4655 = vmatpush3.bf16.msra.mxu0 %v4654_v13  ;;  %v1380_v13 = vld [vmem:[%s5633_s7 + $0xb8] sm:$0xff]  ;;  %v1387_v24 = vld [vmem:[%s5633_s7 + $0xf0] sm:$0xff]  ;;  %v3973_v43 = vld [vmem:[%s5632_s6] ss:$0 sm:$0xff] }
  0x31   :  { %4661 = vmatpush3.bf16.msra.mxu1 %v4660_v14  ;;  %4662 = vmatprep.subr.bf16.mxu0 %v4821_v3  ;;  %v4720_v14 = vpack.c.bf16 %v1380_v13, %v1379_v10  ;;  %v3957_v46 = vld [vmem:[%s5630_s4] ss:$0 sm:$0xff]  ;;  %v3958_v50 = vld [vmem:[%s5630_s4 + $0x1] ss:$0 sm:$0xff]  ;;  %v3976_v56 = vld [vmem:[%s5632_s6 + $0x3] ss:$0 sm:$0xff] }
  0x32   :  { %4668 = vmatprep.subr.bf16.mxu1 %v4821_v3  ;;  %v3977_v4 = vld [vmem:[%s5632_s6 + $0x4] ss:$0 sm:$0xff] }
  0x33   :  { %4325 = vmatmul.mubr.msk.f32.vlgmr.msra.gmra.mrb[10].mxu0 %vm136_vm1, %v44_v5 }
  0x34   :  { %4336 = vmatmul.mubr.msk.f32.vlgmr.msra.gmra.mrb[10].mxu1 %vm136_vm1, %v44_v5  ;;  %4664 = vmatpush3.bf16.msra.mxu0 %v4663_v19  ;;  %v4711_v5 = vpack.c.bf16 %v1374_v2, %v1373_v1  ;;  %v1385_v19 = vld [vmem:[%s5633_s7 + $0xe0] sm:$0xff] }
  0x35   :  { %4670 = vmatpush3.bf16.msra.mxu1 %v4669_v20  ;;  %4665 = vmatprep.subr.bf16.mxu0 %v4821_v3  ;;  %v1386_v20 = vld [vmem:[%s5633_s7 + $0xe8] sm:$0xff] }
  0x36   :  { %4671 = vmatprep.subr.bf16.mxu1 %v4821_v3  ;;  %4346 = vmatprep.mubr.msk.f32.mxu0 %vm4822_vm0, %v4823_v11  ;;  %v4729_v21 = vpack.c.bf16 %v1386_v20, %v1385_v19  ;;  %v3963_v20 = vld [vmem:[%s5630_s4 + $0x6] ss:$0 sm:$0xff] }
  0x37   :  { %4357 = vmatprep.mubr.msk.f32.mxu1 %vm4822_vm0, %v4823_v11 }
  0x38   :  { %4667 = vmatpush3.bf16.msra.mxu0 %v4666_v25  ;;  %v4726_v25 = vpack.c.bf16 %v1384_v23, %v1383_v22 }
  0x39   :  { %4673 = vmatpush3.bf16.msra.mxu1 %v4672_v26  ;;  %4674 = vmatprep.subr.bf16.mxu0 %v4821_v3  ;;  %v1388_v26 = vld [vmem:[%s5633_s7 + $0xf8] sm:$0xff] }
  0x3a   :  { %4680 = vmatprep.subr.bf16.mxu1 %v4821_v3  ;;  %v4732_v27 = vpack.c.bf16 %v1388_v26, %v1387_v24  ;;  %v3964_v24 = vld [vmem:[%s5630_s4 + $0x7] ss:$0 sm:$0xff] }
  0x3b   :  { %4347 = vmatmul.mubr.msk.f32.vlgmr.msra.gmra.mrb[12].mxu0 %vm136_vm1, %v45_v31 }
  0x3c   :  { %4358 = vmatmul.mubr.msk.f32.vlgmr.msra.gmra.mrb[12].mxu1 %vm136_vm1, %v45_v31  ;;  %4676 = vmatpush3.bf16.msra.mxu0 %v4675_v32 }
  0x3d   :  { %4682 = vmatpush3.bf16.msra.mxu1 %v4681_v33  ;;  %4677 = vmatprep.subr.bf16.mxu0 %v4821_v3 }
  0x3e   :  { %4683 = vmatprep.subr.bf16.mxu1 %v4821_v3  ;;  %4368 = vmatprep.mubr.msk.f32.mxu0 %vm4822_vm0, %v4823_v11 }
  0x3f   :  { %4379 = vmatprep.mubr.msk.f32.mxu1 %vm4822_vm0, %v4823_v11 }
  0x40   :  { %4679 = vmatpush3.bf16.msra.mxu0 %v4678_v38 }
  0x41   :  { %4685 = vmatpush3.bf16.msra.mxu1 %v4684_v39  ;;  %4686 = vmatprep.subr.bf16.mxu0 %v4821_v3 }
  0x42   :  { %4692 = vmatprep.subr.bf16.mxu1 %v4821_v3 }
  0x43   :  { %4369 = vmatmul.mubr.msk.f32.vlgmr.msra.gmra.mrb[14].mxu0 %vm136_vm1, %v45_v31 }
  0x44   :  { %4380 = vmatmul.mubr.msk.f32.vlgmr.msra.gmra.mrb[14].mxu1 %vm136_vm1, %v45_v31  ;;  %4688 = vmatpush3.bf16.msra.mxu0 %v4687_v44  ;;  %v3974_v44 = vld [vmem:[%s5632_s6 + $0x1] ss:$0 sm:$0xff] }
  0x45   :  { %4694 = vmatpush3.bf16.msra.mxu1 %v4693_v45  ;;  %4689 = vmatprep.subr.bf16.mxu0 %v4821_v3 }
  0x46   :  { %4695 = vmatprep.subr.bf16.mxu1 %v4821_v3  ;;  %4390 = vmatprep.mubr.msk.f32.mxu0 %vm4822_vm0, %v4823_v11 }
  0x47   :  { %4401 = vmatprep.mubr.msk.f32.mxu1 %vm4822_vm0, %v4823_v11 }
  0x48   :  { %4691 = vmatpush3.bf16.msra.mxu0 %v4690_v49 }
  0x49   :  { %4697 = vmatpush3.bf16.msra.mxu1 %v4696_v51  ;;  %4698 = vmatprep.subr.bf16.mxu0 %v4821_v3 }
  0x4a   :  { %4704 = vmatprep.subr.bf16.mxu1 %v4821_v3 }
  0x4b   :  { %4391 = vmatmul.mubr.msk.f32.vlgmr.msra.gmra.mrb[16].mxu0 %vm136_vm1, %v46_v54 }
  0x4c   :  { %4402 = vmatmul.mubr.msk.f32.vlgmr.msra.gmra.mrb[16].mxu1 %vm136_vm1, %v46_v54  ;;  %4700 = vmatpush3.bf16.msra.mxu0 %v4699_v55  ;;  %v3975_v55 = vld [vmem:[%s5632_s6 + $0x2] ss:$0 sm:$0xff] }
  0x4d   :  { %4706 = vmatpush3.bf16.msra.mxu1 %v4705_v58  ;;  %4701 = vmatprep.subr.bf16.mxu0 %v4821_v3  ;;  %v3959_v58 = vld [vmem:[%s5630_s4 + $0x2] ss:$0 sm:$0xff] }
  0x4e   :  { %4707 = vmatprep.subr.bf16.mxu1 %v4821_v3  ;;  %4412 = vmatprep.mubr.msk.f32.mxu0 %vm4822_vm0, %v4823_v11 }
  0x4f   :  { %4423 = vmatprep.mubr.msk.f32.mxu1 %vm4822_vm0, %v4823_v11 }
  0x50   :  { %4703 = vmatpush3.bf16.msra.mxu0 %v4702_v62  ;;  %v3960_v62 = vld [vmem:[%s5630_s4 + $0x3] ss:$0 sm:$0xff] }
  0x51   :  { %4709 = vmatpush3.bf16.msra.mxu1 %v4708_v0  ;;  %4710 = vmatprep.subr.bf16.mxu0 %v4821_v3 }
  0x52   :  { %4716 = vmatprep.subr.bf16.mxu1 %v4821_v3 }
  0x53   :  { %4413 = vmatmul.mubr.msk.f32.vlgmr.msra.gmra.mrb[18].mxu0 %vm136_vm1, %v46_v54 }
  0x54   :  { %4424 = vmatmul.mubr.msk.f32.vlgmr.msra.gmra.mrb[18].mxu1 %vm136_vm1, %v46_v54  ;;  %4712 = vmatpush3.bf16.msra.mxu0 %v4711_v5  ;;  %v3978_v5 = vld [vmem:[%s5632_s6 + $0x5] ss:$0 sm:$0xff] }
  0x55   :  { %4718 = vmatpush3.bf16.msra.mxu1 %v4717_v7  ;;  %4713 = vmatprep.subr.bf16.mxu0 %v4821_v3  ;;  %v3961_v7 = vld [vmem:[%s5630_s4 + $0x4] ss:$0 sm:$0xff] }
  0x56   :  { %4719 = vmatprep.subr.bf16.mxu1 %v4821_v3  ;;  %4434 = vmatprep.mubr.msk.f32.mxu0 %vm4822_vm0, %v4823_v11 }
  0x57   :  { %4445 = vmatprep.mubr.msk.f32.mxu1 %vm4822_vm0, %v4823_v11 }
  0x58   :  { %4715 = vmatpush3.bf16.msra.mxu0 %v4714_v12  ;;  %v3962_v12 = vld [vmem:[%s5630_s4 + $0x5] ss:$0 sm:$0xff] }
  0x59   :  { %4721 = vmatpush3.bf16.msra.mxu1 %v4720_v14  ;;  %4722 = vmatprep.subr.bf16.mxu0 %v4821_v3 }
  0x5a   :  { %4728 = vmatprep.subr.bf16.mxu1 %v4821_v3 }
  0x5b   :  { %4435 = vmatmul.mubr.msk.f32.vlgmr.msra.gmra.mrb[20].mxu0 %vm136_vm1, %v47_v17 }
  0x5c   :  { %4446 = vmatmul.mubr.msk.f32.vlgmr.msra.gmra.mrb[20].mxu1 %vm136_vm1, %v47_v17  ;;  %4724 = vmatpush3.bf16.msra.mxu0 %v4723_v18  ;;  %v3980_v18 = vld [vmem:[%s5632_s6 + $0x7] ss:$0 sm:$0xff] }
  0x5d   :  { %4730 = vmatpush3.bf16.msra.mxu1 %v4729_v21  ;;  %4725 = vmatprep.subr.bf16.mxu0 %v4821_v3 }
  0x5e   :  { %4731 = vmatprep.subr.bf16.mxu1 %v4821_v3  ;;  %4456 = vmatprep.mubr.msk.f32.mxu0 %vm4822_vm0, %v4823_v11 }
  0x5f   :  { %4467 = vmatprep.mubr.msk.f32.mxu1 %vm4822_vm0, %v4823_v11 }
  0x60   :  { %4727 = vmatpush3.bf16.msra.mxu0 %v4726_v25 }
  0x61   :  { %4733 = vmatpush3.bf16.msra.mxu1 %v4732_v27  ;;  %4470 = vmatprep.subr.mxu0 %v4823_v11 }
  0x62   :  { %4475 = vmatprep.subr.mxu1 %v4823_v11 }
  0x63   :  { %4457 = vmatmul.mubr.msk.f32.vlgmr.msra.gmra.mrb[22].mxu0 %vm136_vm1, %v47_v17 }
  0x64   :  { %4468 = vmatmul.mubr.msk.f32.vlgmr.msra.gmra.mrb[22].mxu1 %vm136_vm1, %v47_v17  ;;  %4472 = vmatprep.mubr.msk.f32.mxu0 %vm4822_vm0, %v4823_v11  ;;  %v3979_v17 = vld [vmem:[%s5632_s6 + $0x6] ss:$0 sm:$0xff] }
  0x65   :  { %4477 = vmatprep.mubr.msk.f32.mxu1 %vm4822_vm0, %v4823_v11 }
  0xde   :  { %v206_v3 = vpop.f32.mrb[0].mxu0 }
  0xdf   :  { %v4216_v28 = vpop.f32.mrb[1].mxu0  ;;  %v276_v29 = vpop.f32.mrb[0].mxu1  ;;  %v207_v53 = vadd.f32 %v3957_v46, %v206_v3 }
  0xe0   :  { %v4227_v30 = vpop.f32.mrb[1].mxu1  ;;  %v277_v54 = vadd.f32 %v3958_v50, %v276_v29  ;;  %v3989_v28 = vld [vmem:[%s5634_s8] ss:$0 sm:$0xff]  ;;  %v3990_v29 = vld [vmem:[%s5634_s8 + $0x1] ss:$0 sm:$0xff] }
  0xe6   :  { %v346_v31 = vpop.f32.mrb[2].mxu0 }
  0xe7   :  { %v4238_v32 = vpop.f32.mrb[3].mxu0  ;;  %v416_v33 = vpop.f32.mrb[2].mxu1  ;;  %v347_v1 = vadd.f32 %v3959_v58, %v346_v31 }
  0xe8   :  { %v4249_v34 = vpop.f32.mrb[3].mxu1  ;;  %v417_v2 = vadd.f32 %v3960_v62, %v416_v33 }
  0xee   :  { %v489_v35 = vpop.f32.mrb[4].mxu0 }
  0xef   :  { %v4260_v36 = vpop.f32.mrb[5].mxu0  ;;  %v559_v37 = vpop.f32.mrb[4].mxu1  ;;  %v490_v15 = vadd.f32 %v3961_v7, %v489_v35 }
  0xf0   :  { %v4271_v38 = vpop.f32.mrb[5].mxu1  ;;  %v560_v16 = vadd.f32 %v3962_v12, %v559_v37 }
  0xf6   :  { %v5325_v39 = vpop.f32.mrb[6].mxu0 }
  0xf7   :  { %v4282_v40 = vpop.f32.mrb[7].mxu0  ;;  %v5327_v41 = vpop.f32.mrb[6].mxu1  ;;  %v630_v27 = vadd.f32 %v3963_v20, %v5325_v39 }
  0xf8   :  { %v4293_v42 = vpop.f32.mrb[7].mxu1  ;;  %v700_v3 = vadd.f32 %v3964_v24, %v5327_v41 }
  0xfe   :  { %v860_v45 = vpop.f32.mrb[8].mxu0 }
  0xff   :  { %v861_v47 = vadd.f32 %v3973_v43, %v860_v45  ;;  %v930_v48 = vpop.f32.mrb[8].mxu1  ;;  %v4304_v49 = vpop.f32.mrb[9].mxu0 }
 0x100   :  { %v931_v51 = vadd.f32 %v3974_v44, %v930_v48  ;;  %v4315_v52 = vpop.f32.mrb[9].mxu1 }
 0x101   :  { %4471 = vmatpush3.xpose.msk.msra.mxu0 %vm2011_vm2, %v861_v47 }
 0x102   :  { %4476 = vmatpush3.xpose.msk.msra.mxu1 %vm2011_vm2, %v931_v51  ;;  %4480 = vmatprep.subr.mxu0 %v4823_v11 }
 0x103   :  { %4485 = vmatprep.subr.mxu1 %v4823_v11 }
 0x104   :  { %4473 = vmatmul.mubr.msk.f32.vlgmr.msra.gmra.mrb[24].mxu0 %vm2011_vm2, %v207_v53 }
 0x105   :  { %4478 = vmatmul.mubr.msk.f32.vlgmr.msra.gmra.mrb[24].mxu1 %vm2011_vm2, %v277_v54  ;;  %4482 = vmatprep.mubr.msk.f32.mxu0 %vm4822_vm0, %v4823_v11 }
 0x106   :  { %v1000_v57 = vpop.f32.mrb[10].mxu0  ;;  %4487 = vmatprep.mubr.msk.f32.mxu1 %vm4822_vm0, %v4823_v11 }
 0x107   :  { %v1001_v59 = vadd.f32 %v3975_v55, %v1000_v57  ;;  %v1070_v60 = vpop.f32.mrb[10].mxu1  ;;  %v4326_v61 = vpop.f32.mrb[11].mxu0 }
 0x108   :  { %v1071_v63 = vadd.f32 %v3976_v56, %v1070_v60  ;;  %v4337_v0 = vpop.f32.mrb[11].mxu1 }
 0x109   :  { %4481 = vmatpush3.xpose.msk.msra.mxu0 %vm2011_vm2, %v1001_v59 }
 0x10a   :  { %4486 = vmatpush3.xpose.msk.msra.mxu1 %vm2011_vm2, %v1071_v63  ;;  %4490 = vmatprep.subr.mxu0 %v4823_v11 }
 0x10b   :  { %4495 = vmatprep.subr.mxu1 %v4823_v11 }
 0x10c   :  { %4483 = vmatmul.mubr.msk.f32.vlgmr.msra.gmra.mrb[26].mxu0 %vm2011_vm2, %v347_v1 }
 0x10d   :  { %4488 = vmatmul.mubr.msk.f32.vlgmr.msra.gmra.mrb[26].mxu1 %vm2011_vm2, %v417_v2  ;;  %4492 = vmatprep.mubr.msk.f32.mxu0 %vm4822_vm0, %v4823_v11 }
 0x10e   :  { %v1143_v6 = vpop.f32.mrb[12].mxu0  ;;  %4497 = vmatprep.mubr.msk.f32.mxu1 %vm4822_vm0, %v4823_v11 }
 0x10f   :  { %v1144_v8 = vadd.f32 %v3977_v4, %v1143_v6  ;;  %v1213_v9 = vpop.f32.mrb[12].mxu1  ;;  %v4348_v10 = vpop.f32.mrb[13].mxu0 }
 0x110   :  { %v1214_v13 = vadd.f32 %v3978_v5, %v1213_v9  ;;  %v4359_v14 = vpop.f32.mrb[13].mxu1 }
 0x111   :  { %4491 = vmatpush3.xpose.msk.msra.mxu0 %vm2011_vm2, %v1144_v8 }
 0x112   :  { %4496 = vmatpush3.xpose.msk.msra.mxu1 %vm2011_vm2, %v1214_v13  ;;  %4500 = vmatprep.subr.mxu0 %v4823_v11 }
 0x113   :  { %4505 = vmatprep.subr.mxu1 %v4823_v11 }
 0x114   :  { %4493 = vmatmul.mubr.msk.f32.vlgmr.msra.gmra.mrb[28].mxu0 %vm2011_vm2, %v490_v15 }
 0x115   :  { %4498 = vmatmul.mubr.msk.f32.vlgmr.msra.gmra.mrb[28].mxu1 %vm2011_vm2, %v560_v16  ;;  %4502 = vmatprep.mubr.msk.f32.mxu0 %vm4822_vm0, %v4823_v11 }
 0x116   :  { %v1283_v19 = vpop.f32.mrb[14].mxu0  ;;  %4507 = vmatprep.mubr.msk.f32.mxu1 %vm4822_vm0, %v4823_v11 }
 0x117   :  { %v1284_v21 = vadd.f32 %v3979_v17, %v1283_v19  ;;  %v1353_v22 = vpop.f32.mrb[14].mxu1  ;;  %v4370_v23 = vpop.f32.mrb[15].mxu0 }
 0x118   :  { %v1354_v25 = vadd.f32 %v3980_v18, %v1353_v22  ;;  %v4381_v26 = vpop.f32.mrb[15].mxu1 }
 0x119   :  { %4501 = vmatpush3.xpose.msk.msra.mxu0 %vm2011_vm2, %v1284_v21 }
 0x11a   :  { %4506 = vmatpush3.xpose.msk.msra.mxu1 %vm2011_vm2, %v1354_v25  ;;  %4510 = vmatprep.subr.mxu0 %v4823_v11 }
 0x11b   :  { %4515 = vmatprep.subr.mxu1 %v4823_v11 }
 0x11c   :  { %4503 = vmatmul.mubr.msk.f32.vlgmr.msra.gmra.mrb[30].mxu0 %vm2011_vm2, %v630_v27 }
 0x11d   :  { %4508 = vmatmul.mubr.msk.f32.vlgmr.msra.gmra.mrb[30].mxu1 %vm2011_vm2, %v700_v3  ;;  %4512 = vmatprep.mubr.msk.f32.mxu0 %vm4822_vm0, %v4823_v11 }
 0x11e   :  { %4517 = vmatprep.mubr.msk.f32.mxu1 %vm4822_vm0, %v4823_v11  ;;  %v1514_v30 = vpop.f32.mrb[16].mxu0 }
 0x11f   :  { %v1515_v31 = vadd.f32 %v3989_v28, %v1514_v30  ;;  %v4392_v32 = vpop.f32.mrb[17].mxu0  ;;  %v1584_v33 = vpop.f32.mrb[16].mxu1 }
 0x120   :  { %v1585_v34 = vadd.f32 %v3990_v29, %v1584_v33  ;;  %v4403_v35 = vpop.f32.mrb[17].mxu1 }
 0x121   :  { %4511 = vmatpush3.msra.mxu0 %v1515_v31 }
 0x122   :  { %4516 = vmatpush3.msra.mxu1 %v1585_v34  ;;  %4520 = vmatprep.subr.mxu0 %v4823_v11 }
 0x123   :  { %4525 = vmatprep.subr.mxu1 %v4823_v11 }
 0x126   :  { %v5427_v36 = vpop.f32.mrb[18].mxu0 }
 0x127   :  { %v4414_v37 = vpop.f32.mrb[19].mxu0  ;;  %v5429_v38 = vpop.f32.mrb[18].mxu1 }
 0x128   :  { %v4425_v39 = vpop.f32.mrb[19].mxu1 }
 0x12e   :  { %v5431_v40 = vpop.f32.mrb[20].mxu0 }
 0x12f   :  { %v4436_v41 = vpop.f32.mrb[21].mxu0  ;;  %v5433_v42 = vpop.f32.mrb[20].mxu1 }
 0x130   :  { %v4447_v43 = vpop.f32.mrb[21].mxu1 }
 0x136   :  { %v5435_v44 = vpop.f32.mrb[22].mxu0 }
 0x137   :  { %v5437_v45 = vpop.f32.mrb[22].mxu1  ;;  %v4458_v46 = vpop.f32.mrb[23].mxu0 }
 0x138   :  { %v4469_v47 = vpop.f32.mrb[23].mxu1 }
 0x1d7   :  { %v2084_v48 = vpop.f32.mrb[24].mxu0 }
 0x1d8   :  { %v2620_v49 = vmul.f32 0.35355338, %v2084_v48  ;;  %v2160_v50 = vpop.f32.mrb[24].mxu1  ;;  %v4474_v51 = vpop.f32.mrb[25].mxu0 }
 0x1d9   :  { %v4479_v52 = vpop.f32.mrb[25].mxu1  ;;  %v2621_v53 = vmul.f32 0.35355338, %v2160_v50 }
 0x1da   :  { %v2628_v54 = vsel %vm2011_vm2, %v2620_v49, -inf }
 0x1db   :  { %2629 = vmax.xlane.f32.xlu0 %v2628_v54  ;;  %v2631_v55 = vsel %vm2011_vm2, %v2621_v53, -inf }
 0x1df   :  { %2632 = vmax.xlane.f32.xlu0 %v2631_v55  ;;  %v2236_v56 = vpop.f32.mrb[26].mxu0 }
 0x1e0   :  { %v2312_v57 = vpop.f32.mrb[26].mxu1  ;;  %v2622_v58 = vmul.f32 0.35355338, %v2236_v56  ;;  %v4484_v59 = vpop.f32.mrb[27].mxu0 }
 0x1e1   :  { %v4489_v60 = vpop.f32.mrb[27].mxu1  ;;  %v2623_v61 = vmul.f32 0.35355338, %v2312_v57 }
 0x1e2   :  { %v2634_v62 = vsel %vm2011_vm2, %v2622_v58, -inf }
 0x1e3   :  { %2635 = vmax.xlane.f32.xlu1 %v2634_v62  ;;  %v2637_v63 = vsel %vm2011_vm2, %v2623_v61, -inf }
 0x1e7   :  { %2638 = vmax.xlane.f32.xlu1 %v2637_v63  ;;  %v2388_v0 = vpop.f32.mrb[28].mxu0 }
 0x1e8   :  { %v2464_v1 = vpop.f32.mrb[28].mxu1  ;;  %v2624_v2 = vmul.f32 0.35355338, %v2388_v0  ;;  %v4494_v4 = vpop.f32.mrb[29].mxu0 }
 0x1e9   :  { %v2625_v5 = vmul.f32 0.35355338, %v2464_v1  ;;  %v4499_v6 = vpop.f32.mrb[29].mxu1 }
 0x1ea   :  { %v2640_v7 = vsel %vm2011_vm2, %v2624_v2, -inf }
 0x1eb   :  { %v2643_v8 = vsel %vm2011_vm2, %v2625_v5, -inf  ;;  %2641 = vmax.xlane.f32.xlu0 %v2640_v7 }
 0x1ec   :  { %2644 = vmax.xlane.f32.xlu1 %v2643_v8  ;;  %v3992_v8 = vld [vmem:[%s5634_s8 + $0x3] ss:$0 sm:$0xff] }
 0x1ef   :  { %v2540_v9 = vpop.f32.mrb[30].mxu0 }
 0x1f0   :  { %v2626_v10 = vmul.f32 0.35355338, %v2540_v9  ;;  %v2616_v12 = vpop.f32.mrb[30].mxu1  ;;  %v4504_v13 = vpop.f32.mrb[31].mxu0 }
 0x1f1   :  { %v2627_v14 = vmul.f32 0.35355338, %v2616_v12  ;;  %v4509_v15 = vpop.f32.mrb[31].mxu1 }
 0x1f2   :  { %v2646_v16 = vsel %vm2011_vm2, %v2626_v10, -inf }
 0x1f3   :  { %v2649_v17 = vsel %vm2011_vm2, %v2627_v14, -inf  ;;  %2647 = vmax.xlane.f32.xlu0 %v2646_v16 }
 0x1f4   :  { %2650 = vmax.xlane.f32.xlu1 %v2649_v17  ;;  %v3994_v17 = vld [vmem:[%s5634_s8 + $0x5] ss:$0 sm:$0xff] }
 0x268   :  { %v2630_v18 = vpop.xlane.xlu0 %2629 }
 0x269   :  { %v2652_v19 = vsub.f32 %v2620_v49, %v2630_v18 }
 0x26b   :  { %v2660_v20 = vmul.f32 1.442695, %v2652_v19 }
 0x26c   :  { %v2633_v21 = vpop.xlane.xlu0 %2632 }
 0x26d   :  { %4741 = vpow2.f32 %v2660_v20  ;;  %v2653_v22 = vsub.f32 %v2621_v53, %v2633_v21  ;;  %v1868_v21 = vadd.f32 %v3994_v17, %v5433_v42 }
 0x26f   :  { %v2662_v23 = vmul.f32 1.442695, %v2653_v22  ;;  %v3995_v22 = vld [vmem:[%s5634_s8 + $0x6] ss:$0 sm:$0xff] }
 0x270   :  { %v2636_v24 = vpop.xlane.xlu1 %2635 }
 0x271   :  { %4743 = vpow2.f32 %v2662_v23  ;;  %v2654_v25 = vsub.f32 %v2622_v58, %v2636_v24  ;;  %v3996_v24 = vld [vmem:[%s5634_s8 + $0x7] ss:$0 sm:$0xff] }
 0x273   :  { %v2664_v26 = vmul.f32 1.442695, %v2654_v25 }
 0x274   :  { %v2639_v27 = vpop.xlane.xlu1 %2638 }
 0x275   :  { %4745 = vpow2.f32 %v2664_v26  ;;  %v2655_v3 = vsub.f32 %v2623_v61, %v2639_v27  ;;  %v1938_v26 = vadd.f32 %v3995_v22, %v5435_v44 }
 0x277   :  { %v4742_v28 = vpop.eup %4741  ;;  %v2666_v29 = vmul.f32 1.442695, %v2655_v3  ;;  %v2008_v3 = vadd.f32 %v3996_v24, %v5437_v45 }
 0x278   :  { %v2642_v30 = vpop.xlane.xlu0 %2641  ;;  %v2676_v31 = vsel %vm2011_vm2, %v4742_v28, 0.0 }
 0x279   :  { %4747 = vpow2.f32 %v2666_v29  ;;  %v2645_v32 = vpop.xlane.xlu1 %2644  ;;  %v2656_v33 = vsub.f32 %v2624_v2, %v2642_v30  ;;  %2677 = vadd.xlane.f32.xlu0 %v2676_v31  ;;  %v3991_v2 = vld [vmem:[%s5634_s8 + $0x2] ss:$0 sm:$0xff]  ;;  %v3309_v31 = vld [vmem:[%s5635_s9 + $0x8] sm:$0xff] }
 0x27a   :  { %v2657_v34 = vsub.f32 %v2625_v5, %v2645_v32  ;;  %v1655_v7 = vadd.f32 %v3991_v2, %v5427_v36  ;;  %v1725_v36 = vadd.f32 %v3992_v8, %v5429_v38  ;;  %v3308_v30 = vld [vmem:[%s5635_s9] sm:$0xff]  ;;  %v3310_v32 = vld [vmem:[%s5635_s9 + $0x10] sm:$0xff] }
 0x27b   :  { %v4744_v35 = vpop.eup %4743  ;;  %v2668_v37 = vmul.f32 1.442695, %v2656_v33 }
 0x27c   :  { %v2670_v39 = vmul.f32 1.442695, %v2657_v34  ;;  %v2679_v41 = vsel %vm2011_vm2, %v4744_v35, 0.0 }
 0x27d   :  { %4749 = vpow2.f32 %v2668_v37  ;;  %2680 = vadd.xlane.f32.xlu1 %v2679_v41  ;;  %v3312_v41 = vld [vmem:[%s5635_s9 + $0x20] sm:$0xff] }
 0x27e   :  { %4751 = vpow2.f32 %v2670_v39 }
 0x27f   :  { %v4746_v43 = vpop.eup %4745 }
 0x280   :  { %v2648_v46 = vpop.xlane.xlu0 %2647  ;;  %v2682_v47 = vsel %vm2011_vm2, %v4746_v43, 0.0 }
 0x281   :  { %v2651_v48 = vpop.xlane.xlu1 %2650  ;;  %v2658_v49 = vsub.f32 %v2626_v10, %v2648_v46  ;;  %2683 = vadd.xlane.f32.xlu0 %v2682_v47  ;;  %v3313_v47 = vld [vmem:[%s5635_s9 + $0x28] sm:$0xff] }
 0x282   :  { %v2659_v50 = vsub.f32 %v2627_v14, %v2651_v48  ;;  %v3993_v14 = vld [vmem:[%s5634_s8 + $0x4] ss:$0 sm:$0xff] }
 0x283   :  { %v4748_v51 = vpop.eup %4747  ;;  %v2672_v52 = vmul.f32 1.442695, %v2658_v49  ;;  %v1798_v38 = vadd.f32 %v3993_v14, %v5431_v40 }
 0x284   :  { %v2674_v53 = vmul.f32 1.442695, %v2659_v50  ;;  %v2685_v54 = vsel %vm2011_vm2, %v4748_v51, 0.0  ;;  %v3314_v50 = vld [vmem:[%s5635_s9 + $0x30] sm:$0xff] }
 0x285   :  { %4753 = vpow2.f32 %v2672_v52  ;;  %2686 = vadd.xlane.f32.xlu1 %v2685_v54  ;;  %v3315_v52 = vld [vmem:[%s5635_s9 + $0x38] sm:$0xff] }
 0x286   :  { %4755 = vpow2.f32 %v2674_v53 }
 0x287   :  { %v5451_v55 = vpop.eup %4749 }
 0x288   :  { %v5453_v56 = vpop.eup %4751  ;;  %v2688_v57 = vsel %vm2011_vm2, %v5451_v55, 0.0 }
 0x289   :  { %v2691_v58 = vsel %vm2011_vm2, %v5453_v56, 0.0  ;;  %2689 = vadd.xlane.f32.xlu0 %v2688_v57 }
 0x28a   :  { %2692 = vadd.xlane.f32.xlu1 %v2691_v58 }
 0x28f   :  { %v5459_v59 = vpop.eup %4753 }
 0x290   :  { %v5461_v60 = vpop.eup %4755  ;;  %v2694_v61 = vsel %vm2011_vm2, %v5459_v59, 0.0 }
 0x291   :  { %v2697_v62 = vsel %vm2011_vm2, %v5461_v60, 0.0  ;;  %2695 = vadd.xlane.f32.xlu0 %v2694_v61 }
 0x292   :  { %2698 = vadd.xlane.f32.xlu1 %v2697_v62 }
 0x306   :  { %v2678_v63 = vpop.xlane.xlu0 %2677 }
 0x307   :  { %4757 = vrcp.f32 %v2678_v63 }
 0x30a   :  { %v2681_v0 = vpop.xlane.xlu1 %2680 }
 0x30b   :  { %4759 = vrcp.f32 %v2681_v0 }
 0x30e   :  { %v2684_v1 = vpop.xlane.xlu0 %2683 }
 0x30f   :  { %4761 = vrcp.f32 %v2684_v1 }
 0x311   :  { %v4758_v4 = vpop.eup %4757 }
 0x312   :  { %v2701_v5 = vmul.f32 %v4758_v4, %v4742_v28  ;;  %v2687_v6 = vpop.xlane.xlu1 %2686 }
 0x313   :  { %4763 = vrcp.f32 %v2687_v6 }
 0x314   :  { %2716 = vst.msk [vmem:[#allocation4] sm:$0xff] %vm2011_vm2, %v2701_v5  ;;  %4513 = vmatmul.mubr.msk.f32.vlgmr.msra.gmra.mrb[32].mxu0 %vm2011_vm2, %v2701_v5 }
 0x315   :  { %v4760_v9 = vpop.eup %4759  ;;  %4521 = vmatpush3.msra.mxu0 %v1655_v7  ;;  %4522 = vmatprep.mubr.msk.f32.mxu0 %vm4822_vm0, %v4823_v11 }
 0x316   :  { %v2703_v10 = vmul.f32 %v4760_v9, %v4744_v35  ;;  %v2690_v12 = vpop.xlane.xlu0 %2689  ;;  %4530 = vmatprep.subr.mxu0 %v4823_v11  ;;  %v3311_v35 = vld [vmem:[%s5635_s9 + $0x18] sm:$0xff]  ;;  %s4824_s9 = smov [#allocation4]  }
 0x317   :  { %v2693_v13 = vpop.xlane.xlu1 %2692  ;;  %4765 = vrcp.f32 %v2690_v12  ;;  %s3942_s14 = sshll.u32 %s4824_s9, 4  ;;  %s3943_s14 = int_to_ptr.vmem [resolvable:$true] %s3942_s14 }
 0x318   :  { %2717 = vst.msk [vmem:[#allocation4 + $0x8] sm:$0xff] %vm2011_vm2, %v2703_v10  ;;  %4767 = vrcp.f32 %v2693_v13  ;;  %4518 = vmatmul.mubr.msk.f32.vlgmr.msra.gmra.mrb[32].mxu1 %vm2011_vm2, %v2703_v10  ;;  %s4773_s0 = scalar_lea.vmem %s3943_s14, 1024  ;;  %p4778_p1 = scmp.lt.s32.totalorder %s3943_s14, %s3943_s14 }
 0x319   :  { %v4762_v15 = vpop.eup %4761  ;;  %4526 = vmatpush3.msra.mxu1 %v1725_v36  ;;  %4527 = vmatprep.mubr.msk.f32.mxu1 %vm4822_vm0, %v4823_v11  ;;  %p4774_p0 = scmp.ne.s32.totalorder %s3943_s14, %s4773_s0  ;;  %p4779_p2 = scmp.lt.s32.totalorder %s4773_s0, %s4773_s0 }
 0x31a   :  { %v2705_v16 = vmul.f32 %v4762_v15, %v4746_v43  ;;  %4535 = vmatprep.subr.mxu1 %v4823_v11 }
 0x31b   :  { %p4780_p3 = por %p4779_p2, %p4778_p1 }
 0x31c   :  { %2718 = vst.msk [vmem:[#allocation4 + $0x10] sm:$0xff] %vm2011_vm2, %v2705_v16  ;;  %4523 = vmatmul.mubr.msk.f32.vlgmr.msra.gmra.mrb[34].mxu0 %vm2011_vm2, %v2705_v16 }
 0x31d   :  { %v4764_v18 = vpop.eup %4763  ;;  %4531 = vmatpush3.msra.mxu0 %v1798_v38  ;;  %4532 = vmatprep.mubr.msk.f32.mxu0 %vm4822_vm0, %v4823_v11  ;;  %p4781_p4 = pnand %p4780_p3, %p4774_p0 }
 0x31e   :  { %v2707_v19 = vmul.f32 %v4764_v18, %v4748_v51  ;;  %v2696_v20 = vpop.xlane.xlu0 %2695  ;;  %4540 = vmatprep.subr.mxu0 %v4823_v11 }
 0x31f   :  { %v2699_v40 = vpop.xlane.xlu1 %2698  ;;  %4769 = vrcp.f32 %v2696_v20 }
 0x320   :  { %2719 = vst.msk [vmem:[#allocation4 + $0x18] sm:$0xff] %vm2011_vm2, %v2707_v19  ;;  %4771 = vrcp.f32 %v2699_v40  ;;  %4528 = vmatmul.mubr.msk.f32.vlgmr.msra.gmra.mrb[34].mxu1 %vm2011_vm2, %v2707_v19 }
 0x321   :  { %v4766_v23 = vpop.eup %4765  ;;  %4536 = vmatpush3.msra.mxu1 %v1868_v21  ;;  %4537 = vmatprep.mubr.msk.f32.mxu1 %vm4822_vm0, %v4823_v11 }
 0x322   :  { %v4768_v42 = vpop.eup %4767  ;;  %v2709_v25 = vmul.f32 %v4766_v23, %v5451_v55  ;;  %4545 = vmatprep.subr.mxu1 %v4823_v11 }
 0x323   :  { %v2711_v27 = vmul.f32 %v4768_v42, %v5453_v56 }
 0x324   :  { %2720 = vst.msk [vmem:[#allocation4 + $0x20] sm:$0xff] %vm2011_vm2, %v2709_v25  ;;  %4533 = vmatmul.mubr.msk.f32.vlgmr.msra.gmra.mrb[36].mxu0 %vm2011_vm2, %v2709_v25 }
 0x325   :  { %2721 = vst.msk [vmem:[#allocation4 + $0x28] sm:$0xff] %vm2011_vm2, %v2711_v27  ;;  %4538 = vmatmul.mubr.msk.f32.vlgmr.msra.gmra.mrb[36].mxu1 %vm2011_vm2, %v2711_v27  ;;  %4541 = vmatpush3.msra.mxu0 %v1938_v26 }
 0x326   :  { %4546 = vmatpush3.msra.mxu1 %v2008_v3  ;;  %4542 = vmatprep.mubr.msk.f32.mxu0 %vm4822_vm0, %v4823_v11 }
 0x327   :  { %4547 = vmatprep.mubr.msk.f32.mxu1 %vm4822_vm0, %v4823_v11  ;;  %4550 = vmatprep.subr.mxu0 %v4823_v11 }
 0x328   :  { %4555 = vmatprep.subr.mxu1 %v4823_v11 }
 0x329   :  { %v4770_v44 = vpop.eup %4769 }
 0x32a   :  { %v4772_v45 = vpop.eup %4771  ;;  %v2713_v28 = vmul.f32 %v4770_v44, %v5459_v59 }
 0x32b   :  { %v2715_v29 = vmul.f32 %v4772_v45, %v5461_v60 }
 0x32c   :  { %2722 = vst.msk [vmem:[#allocation4 + $0x30] sm:$0xff] %vm2011_vm2, %v2713_v28  ;;  %4543 = vmatmul.mubr.msk.f32.vlgmr.msra.gmra.mrb[38].mxu0 %vm2011_vm2, %v2713_v28 }
 0x32d   :  { %2723 = vst.msk [vmem:[#allocation4 + $0x38] sm:$0xff] %vm2011_vm2, %v2715_v29  ;;  %4548 = vmatmul.mubr.msk.f32.vlgmr.msra.gmra.mrb[38].mxu1 %vm2011_vm2, %v2715_v29  ;;  %4552 = vmatprep.mubr.msk.f32.mxu0 %vm4822_vm0, %v4823_v11 }
 0x32e   :  { %4557 = vmatprep.mubr.msk.f32.mxu1 %vm4822_vm0, %v4823_v11  ;;  %4551 = vmatpush3.msra.mxu0 %v3308_v30 }
 0x32f   :  { %4560 = vmatprep.subr.mxu0 %v4823_v11  ;;  %4556 = vmatpush3.msra.mxu1 %v3309_v31 }
 0x330   :  { %4565 = vmatprep.subr.mxu1 %v4823_v11 }
 0x3e7   :  { %v2793_v33 = vpop.f32.mrb[32].mxu0 }
 0x3e8   :  { %v4514_v34 = vpop.f32.mrb[33].mxu0  ;;  %4553 = vmatmul.mubr.msk.f32.vlgmr.msra.gmra.mrb[40].mxu0 %vm2011_vm2, %v2793_v33 }
 0x3e9   :  { %4561 = vmatpush3.msra.mxu0 %v3310_v32  ;;  %4562 = vmatprep.mubr.msk.f32.mxu0 %vm4822_vm0, %v4823_v11 }
 0x3ea   :  { %4570 = vmatprep.subr.mxu0 %v4823_v11 }
 0x3eb   :  { %v2866_v37 = vpop.f32.mrb[32].mxu1 }
 0x3ec   :  { %v4519_v39 = vpop.f32.mrb[33].mxu1  ;;  %4558 = vmatmul.mubr.msk.f32.vlgmr.msra.gmra.mrb[40].mxu1 %vm2011_vm2, %v2866_v37 }
 0x3ed   :  { %4566 = vmatpush3.msra.mxu1 %v3311_v35  ;;  %4567 = vmatprep.mubr.msk.f32.mxu1 %vm4822_vm0, %v4823_v11 }
 0x3ee   :  { %4575 = vmatprep.subr.mxu1 %v4823_v11 }
 0x3ef   :  { %v2939_v43 = vpop.f32.mrb[34].mxu0 }
 0x3f0   :  { %v4524_v46 = vpop.f32.mrb[35].mxu0  ;;  %4563 = vmatmul.mubr.msk.f32.vlgmr.msra.gmra.mrb[42].mxu0 %vm2011_vm2, %v2939_v43 }
 0x3f1   :  { %4571 = vmatpush3.msra.mxu0 %v3312_v41  ;;  %4572 = vmatprep.mubr.msk.f32.mxu0 %vm4822_vm0, %v4823_v11 }
 0x3f2   :  { %4580 = vmatprep.subr.mxu0 %v4823_v11 }
 0x3f3   :  { %v3012_v48 = vpop.f32.mrb[34].mxu1 }
 0x3f4   :  { %v4529_v49 = vpop.f32.mrb[35].mxu1  ;;  %4568 = vmatmul.mubr.msk.f32.vlgmr.msra.gmra.mrb[42].mxu1 %vm2011_vm2, %v3012_v48 }
 0x3f5   :  { %4576 = vmatpush3.msra.mxu1 %v3313_v47  ;;  %4577 = vmatprep.mubr.msk.f32.mxu1 %vm4822_vm0, %v4823_v11 }
 0x3f6   :  { %4585 = vmatprep.subr.mxu1 %v4823_v11 }
 0x3f7   :  { %v3085_v51 = vpop.f32.mrb[36].mxu0 }
 0x3f8   :  { %v3158_v53 = vpop.f32.mrb[36].mxu1  ;;  %v4534_v54 = vpop.f32.mrb[37].mxu0  ;;  %4573 = vmatmul.mubr.msk.f32.vlgmr.msra.gmra.mrb[44].mxu0 %vm2011_vm2, %v3085_v51 }
 0x3f9   :  { %v4539_v55 = vpop.f32.mrb[37].mxu1  ;;  %4578 = vmatmul.mubr.msk.f32.vlgmr.msra.gmra.mrb[44].mxu1 %vm2011_vm2, %v3158_v53  ;;  %4581 = vmatpush3.msra.mxu0 %v3314_v50 }
 0x3fa   :  { %4582 = vmatprep.mubr.msk.f32.mxu0 %vm4822_vm0, %v4823_v11  ;;  %4586 = vmatpush3.msra.mxu1 %v3315_v52 }
 0x3fb   :  { %4587 = vmatprep.mubr.msk.f32.mxu1 %vm4822_vm0, %v4823_v11 }
 0x3ff   :  { %v3231_v56 = vpop.f32.mrb[38].mxu0 }
 0x400   :  { %v3304_v57 = vpop.f32.mrb[38].mxu1  ;;  %v4544_v58 = vpop.f32.mrb[39].mxu0  ;;  %4583 = vmatmul.mubr.msk.f32.vlgmr.msra.gmra.mrb[46].mxu0 %vm2011_vm2, %v3231_v56 }
 0x401   :  { %v4549_v59 = vpop.f32.mrb[39].mxu1  ;;  %4588 = vmatmul.mubr.msk.f32.vlgmr.msra.gmra.mrb[46].mxu1 %vm2011_vm2, %v3304_v57 }
 0x402   :  { %4784 = shalt.err (!%p4781_p4)
}
 0x403   :  { %s4785_s17 = scalar_lea.hbm %s5638_s12, 1024 }
 0x404   :  { %p4786_p5 = scmp.ne.s32.totalorder %s5638_s12, %s4785_s17  ;;  %p4789_p6 = scmp.lt.u32.totalorder %s4785_s17, %s5638_s12 }
 0x406   :  { %p4791_p7 = pnand %p4789_p6, %p4786_p5 }
 0x408   :  { %4794 = shalt.err (!%p4791_p7)
}
 0x409   :  { %s4825_s20 = smov 128   ;;  %s4826_s1 = smov 8   ;;  %v4037_v9 = vld [vmem:[%s5636_s10] ss:$0 sm:$0xff] }
 0x40a   :  { %3948 = dma.vmem_to_hbm [thread:$0]  %s3943_s14, 1024, %s5638_s12, [#allocation5], %s4825_s20, %s4825_s20, %s4826_s1  }
 0x40b   :  { %s4827_s10 = smov [#allocation2]  }
 0x40c   :  { %s3930_s12 = sshll.u32 %s4827_s10, 4  ;;  %s3931_s12 = int_to_ptr.vmem [resolvable:$true] %s3930_s12 }
 0x40d   :  { %s4795_s23 = scalar_lea.vmem %s3931_s12, 256  ;;  %p4800_p9 = scmp.lt.s32.totalorder %s3931_s12, %s3931_s12 }
 0x40e   :  { %p4796_p8 = scmp.ne.s32.totalorder %s3931_s12, %s4795_s23  ;;  %p4801_p10 = scmp.lt.s32.totalorder %s4795_s23, %s4795_s23 }
 0x410   :  { %p4802_p11 = por %p4801_p10, %p4800_p9 }
 0x412   :  { %p4803_p12 = pnand %p4802_p11, %p4796_p8 }
 0x4bb   :  { %v3385_v11 = vpop.f32.mrb[40].mxu0 }
 0x4bc   :  { %v4554_v60 = vpop.f32.mrb[41].mxu0  ;;  %v3900_v62 = vsel %vm136_vm1, %v3385_v11, 0.0 }
 0x4bf   :  { %v3458_v61 = vpop.f32.mrb[40].mxu1 }
 0x4c0   :  { %v3901_v63 = vsel %vm136_vm1, %v3458_v61, 0.0  ;;  %v4559_v0 = vpop.f32.mrb[41].mxu1 }
 0x4c1   :  { %v3902_v1 = vadd.f32 %v3901_v63, %v3900_v62 }
 0x4c3   :  { %v3531_v2 = vpop.f32.mrb[42].mxu0 }
 0x4c4   :  { %v3903_v4 = vsel %vm136_vm1, %v3531_v2, 0.0  ;;  %v4564_v5 = vpop.f32.mrb[43].mxu0 }
 0x4c5   :  { %v3904_v6 = vadd.f32 %v3903_v4, %v3902_v1 }
 0x4c7   :  { %v3604_v7 = vpop.f32.mrb[42].mxu1 }
 0x4c8   :  { %v3905_v8 = vsel %vm136_vm1, %v3604_v7, 0.0  ;;  %v4569_v10 = vpop.f32.mrb[43].mxu1 }
 0x4c9   :  { %v3906_v12 = vadd.f32 %v3905_v8, %v3904_v6 }
 0x4cb   :  { %v3921_v36 = vadd.f32 %v4037_v9, %v3906_v12  ;;  %v3677_v13 = vpop.f32.mrb[44].mxu0 }
 0x4cc   :  { %v3907_v14 = vsel %vm136_vm1, %v3677_v13, 0.0  ;;  %v3750_v15 = vpop.f32.mrb[44].mxu1  ;;  %v4574_v16 = vpop.f32.mrb[45].mxu0 }
 0x4cd   :  { %3923 = vst.msk [vmem:[#allocation2] sm:$0xff] %vm136_vm1, %v3921_v36  ;;  %v3908_v38 = vsel %vm136_vm1, %v3750_v15, 0.0  ;;  %v4579_v17 = vpop.f32.mrb[45].mxu1 }
 0x4ce   :  { %v3909_v18 = vadd.f32 %v3908_v38, %v3907_v14 }
 0x4d3   :  { %v3823_v19 = vpop.f32.mrb[46].mxu0 }
 0x4d4   :  { %v3910_v20 = vsel %vm136_vm1, %v3823_v19, 0.0  ;;  %v3896_v21 = vpop.f32.mrb[46].mxu1  ;;  %v4584_v40 = vpop.f32.mrb[47].mxu0 }
 0x4d5   :  { %v3911_v22 = vadd.f32 %v3910_v20, %v3909_v18  ;;  %v4589_v23 = vpop.f32.mrb[47].mxu1  ;;  %v3912_v24 = vsel %vm136_vm1, %v3896_v21, 0.0 }
 0x4d7   :  { %v3913_v42 = vadd.f32 %v3912_v24, %v3911_v22 }
 0x4d9   :  { %v3922_v25 = vadd.f32 %v4037_v9, %v3913_v42 }
 0x4db   :  { %3924 = vst.msk [vmem:[#allocation2 + $0x8] sm:$0xff] %vm136_vm1, %v3922_v25 }
 0x4dc   :  { %4806 = shalt.err (!%p4803_p12)
}
 0x4dd   :  { %s4807_s5 = scalar_lea.hbm %s5637_s11, 256 }
 0x4de   :  { %p4808_p13 = scmp.ne.s32.totalorder %s5637_s11, %s4807_s5  ;;  %p4811_p0 = scmp.lt.u32.totalorder %s4807_s5, %s5637_s11 }
 0x4e0   :  { %p4813_p1 = pnand %p4811_p0, %p4808_p13 }
 0x4e2   :  { %4816 = shalt.err (!%p4813_p1)
}
 0x4e3   :  { %3936 = dma.vmem_to_hbm [thread:$0]  %s3931_s12, 256, %s5637_s11, [#allocation3], %s4825_s20, %s4825_s20, %s4826_s1  }
 0x4e4   :  { %4817 = dma.done.wait [#allocation3], 256  }
 0x4e5   :  { %4818 = vsyncadd [#allocation3], 4294967040 }
 0x4e6   :  { %4819 = dma.done.wait [#allocation5], 1024  }
 0x4e7   :  { %4820 = vsyncadd [#allocation5], 4294966272 }
 0x4e8   :  { %3955 = vsyncpa [#allocation3], 1 }
 0x4e9   :  { %3956 = vsyncpa [#allocation5], 1 }

</bundles_post_ra>
